<compile_context>
chip_gen: v7x
topology: tpu7x:2x2x1
jax: 0.10.0
libtpu: 0.0.40
codegen_flags: <defaults>
</compile_context>

<pallas_src>
import jax
import jax.numpy as jnp
from jax.experimental import pallas as pl
from jax.experimental.pallas import tpu as pltpu


# ---------------- fused Pallas kernel (entire forward pass, one grid step) ----------------

def fused_gcn_forward(x_pad, a_norm, w_stack, b_stack, pool_mat, w_fc_pad, b_fc_pad):
    n, hp = x_pad.shape
    n_layers = w_stack.shape[0]
    gp = pool_mat.shape[0]
    op = w_fc_pad.shape[1]

    def kernel(x_ref, a_ref, w_ref, b_ref, p_ref, wfc_ref, bfc_ref, o_ref):
        a = a_ref[...]                                   # (N, N) bf16, fetched once
        h = x_ref[...]                                   # (N, HP) bf16

        # Three GCN layers: static unroll is fine at 3 iterations.
        for l in range(n_layers):
            # Feature transform XW = H @ W_l (bf16 x bf16, f32 accumulation).
            xw = jnp.dot(h, w_ref[l], preferred_element_type=jnp.float32)
            # Aggregation: A_hat @ XW, then bias + relu on the f32 result (VPU).
            agg = jnp.dot(a, xw.astype(jnp.bfloat16),
                          preferred_element_type=jnp.float32)
            h = jnp.maximum(agg + b_ref[l], 0.0).astype(jnp.bfloat16)

        # Epilogue: mean-pool (as GEMM with the pooling matrix), fc, sigmoid.
        pooled = jnp.dot(p_ref[...], h, preferred_element_type=jnp.float32)
        logits = jnp.dot(pooled.astype(jnp.bfloat16), wfc_ref[...],
                         preferred_element_type=jnp.float32) + bfc_ref[...]
        o_ref[...] = jax.nn.sigmoid(logits)

    return pl.pallas_call(
        kernel,
        out_shape=jax.ShapeDtypeStruct((gp, op), jnp.float32),
        grid=(1,),
        in_specs=[
            pl.BlockSpec((n, hp), lambda i: (0, 0)),               # X (padded, bf16)
            pl.BlockSpec((n, n), lambda i: (0, 0)),                # A_hat (resident, bf16)
            pl.BlockSpec((n_layers, hp, hp), lambda i: (0, 0, 0)),  # W stack (bf16)
            pl.BlockSpec((n_layers, 1, hp), lambda i: (0, 0, 0)),   # b stack (f32)
            pl.BlockSpec((gp, n), lambda i: (0, 0)),               # pooling matrix (bf16)
            pl.BlockSpec((hp, op), lambda i: (0, 0)),              # W_fc (padded, bf16)
            pl.BlockSpec((1, op), lambda i: (0, 0)),               # b_fc (padded, f32)
        ],
        out_specs=pl.BlockSpec((gp, op), lambda i: (0, 0)),
        compiler_params=pltpu.CompilerParams(
            dimension_semantics=("arbitrary",),
            # Live buffers total ~0.6 MiB; 8 MiB leaves ample headroom and is safe
            # on every generation (v7x physical VMEM is 64 MiB).
            vmem_limit_bytes=8 * 1024 * 1024,
        ),
    )(x_pad, a_norm, w_stack, b_stack, pool_mat, w_fc_pad, b_fc_pad)


# ---------------- glue: normalization / pooling / padding (plain JAX) ----------------

def build_normalized_adj(edge_index, num_nodes):
    # GCNConv default: add self-loops, symmetric normalization D^-1/2 (A+I) D^-1/2
    a = jnp.zeros((num_nodes, num_nodes), jnp.float32)
    a = a.at[edge_index[0], edge_index[1]].set(1.0)
    a_hat = a + jnp.eye(num_nodes, dtype=jnp.float32)
    deg = a_hat.sum(axis=1)
    d_inv_sqrt = 1.0 / jnp.sqrt(deg)
    return d_inv_sqrt[:, None] * a_hat * d_inv_sqrt[None, :]


def build_pool_matrix(batch, padded_graphs):
    onehot = (jnp.arange(padded_graphs)[:, None] == batch[None, :]).astype(jnp.float32)
    counts = jnp.maximum(onehot.sum(axis=1, keepdims=True), 1.0)   # guard empty graphs
    return onehot / counts


def pad_to(arr, shape):
    out = jnp.zeros(shape, arr.dtype)
    return out.at[tuple(slice(0, s) for s in arr.shape)].set(arr)


def reference_forward(x, a_norm, batch, num_graphs, p):
    # pure-JAX f32 reference for a sanity check
    def layer(h, w, b):
        return jnp.maximum(a_norm @ (h @ w) + b, 0.0)
    h = layer(x, p["w1"], p["b1"])
    h = layer(h, p["w2"], p["b2"])
    h = layer(h, p["w3"], p["b3"])
    pooled = build_pool_matrix(batch, num_graphs) @ h
    return jax.nn.sigmoid(pooled @ p["w_fc"] + p["b_fc"])


# ---------------- main ----------------

if __name__ == "__main__":
    G = 2                       # graphs in the batch
    NODES_PER_GRAPH = 64
    N = G * NODES_PER_GRAPH     # 128 nodes -> lane aligned
    F_IN, HIDDEN = 8, 32        # logical model dims (as in the PyTorch module)
    HP = 128                    # padded, lane-dense feature width
    GP = 8                      # padded graph count (sublane aligned)
    OP = 128                    # padded fc output width (lane-dense stores)

    # deterministic graphs: undirected ring inside each graph
    src, dst = [], []
    for g in range(G):
        base = g * NODES_PER_GRAPH
        for i in range(NODES_PER_GRAPH):
            j = (i + 1) % NODES_PER_GRAPH
            src += [base + i, base + j]
            dst += [base + j, base + i]
    edge_index = jnp.array([src, dst], dtype=jnp.int32)
    batch = jnp.repeat(jnp.arange(G, dtype=jnp.int32), NODES_PER_GRAPH)

    key = jax.random.PRNGKey(0)
    ks = jax.random.split(key, 9)
    x = jax.random.normal(ks[0], (N, F_IN), dtype=jnp.float32)

    params = {
        "w1": jax.random.normal(ks[1], (F_IN, HIDDEN), jnp.float32) * 0.1,
        "b1": jax.random.normal(ks[2], (1, HIDDEN), jnp.float32) * 0.01,
        "w2": jax.random.normal(ks[3], (HIDDEN, HIDDEN), jnp.float32) * 0.1,
        "b2": jax.random.normal(ks[4], (1, HIDDEN), jnp.float32) * 0.01,
        "w3": jax.random.normal(ks[5], (HIDDEN, HIDDEN), jnp.float32) * 0.1,
        "b3": jax.random.normal(ks[6], (1, HIDDEN), jnp.float32) * 0.01,
        "w_fc": jax.random.normal(ks[7], (HIDDEN, 1), jnp.float32) * 0.1,
        "b_fc": jax.random.normal(ks[8], (1, 1), jnp.float32) * 0.01,
    }

    a_norm = build_normalized_adj(edge_index, N)
    pool_mat = build_pool_matrix(batch, GP)            # (GP, N), rows >= G are zero

    # zero-pad to lane/sublane-friendly shapes (mathematically exact: pads are 0),
    # bf16 for all MXU operands, f32 for biases.
    x_pad = pad_to(x, (N, HP)).astype(jnp.bfloat16)
    w_stack = jnp.stack([pad_to(params["w1"], (HP, HP)),
                         pad_to(params["w2"], (HP, HP)),
                         pad_to(params["w3"], (HP, HP))]).astype(jnp.bfloat16)
    b_stack = jnp.stack([pad_to(params["b1"], (1, HP)),
                         pad_to(params["b2"], (1, HP)),
                         pad_to(params["b3"], (1, HP))])         # (3, 1, HP) f32
    w_fc_pad = pad_to(params["w_fc"], (HP, OP)).astype(jnp.bfloat16)
    b_fc_pad = pad_to(params["b_fc"], (1, OP))                   # f32

    out_full = fused_gcn_forward(
        x_pad, a_norm.astype(jnp.bfloat16), w_stack, b_stack,
        pool_mat.astype(jnp.bfloat16), w_fc_pad, b_fc_pad)
    out = out_full[:G, :1]                             # (G, 1) sigmoid probs
    jax.block_until_ready(out)

    ref = reference_forward(x, a_norm, batch, G, params)
    assert out.shape == (G, 1)
    assert jnp.allclose(out, ref, atol=3e-2, rtol=3e-2), (out, ref)
    print("KERNEL_OK")
</pallas_src>

<mosaic_0001>
module attributes {stable_mosaic.version = 11 : i64} {
  func.func @kernel(%arg0: i32, %arg1: memref<128x128xbf16, #tpu.memory_space<vmem>>, %arg2: memref<128x128xbf16, #tpu.memory_space<vmem>>, %arg3: memref<3x128x128xbf16, #tpu.memory_space<vmem>>, %arg4: memref<3x1x128xf32, #tpu.memory_space<vmem>>, %arg5: memref<8x128xbf16, #tpu.memory_space<vmem>>, %arg6: memref<128x128xbf16, #tpu.memory_space<vmem>>, %arg7: memref<1x128xf32, #tpu.memory_space<vmem>>, %arg8: memref<8x128xf32, #tpu.memory_space<vmem>>) attributes {dimension_semantics = [#tpu.dimension_semantics<arbitrary>], iteration_bounds = array<i64: 1>, scalar_prefetch = 0 : i64, scratch_operands = 0 : i64, tpu.core_type = #tpu.core_type<tc>, window_params = [{pipeline_mode = #tpu.pipeline_mode<synchronous>, transform_indices = @transform_0, window_bounds = array<i64: 128, 128>}, {pipeline_mode = #tpu.pipeline_mode<synchronous>, transform_indices = @transform_1, window_bounds = array<i64: 128, 128>}, {pipeline_mode = #tpu.pipeline_mode<synchronous>, transform_indices = @transform_2, window_bounds = array<i64: 3, 128, 128>}, {pipeline_mode = #tpu.pipeline_mode<synchronous>, transform_indices = @transform_3, window_bounds = array<i64: 3, 1, 128>}, {pipeline_mode = #tpu.pipeline_mode<synchronous>, transform_indices = @transform_4, window_bounds = array<i64: 8, 128>}, {pipeline_mode = #tpu.pipeline_mode<synchronous>, transform_indices = @transform_5, window_bounds = array<i64: 128, 128>}, {pipeline_mode = #tpu.pipeline_mode<synchronous>, transform_indices = @transform_6, window_bounds = array<i64: 1, 128>}, {pipeline_mode = #tpu.pipeline_mode<synchronous>, transform_indices = @transform_7, window_bounds = array<i64: 8, 128>}]} {
    %c0 = arith.constant 0 : index
    %c0_0 = arith.constant 0 : index
    %0 = vector.load %arg2[%c0, %c0_0] : memref<128x128xbf16, #tpu.memory_space<vmem>>, vector<128x128xbf16>
    %c0_1 = arith.constant 0 : index
    %c0_2 = arith.constant 0 : index
    %1 = vector.load %arg1[%c0_1, %c0_2] : memref<128x128xbf16, #tpu.memory_space<vmem>>, vector<128x128xbf16>
    %c0_3 = arith.constant 0 : index
    %c0_4 = arith.constant 0 : index
    %c0_5 = arith.constant 0 : index
    %2 = vector.load %arg3[%c0_3, %c0_4, %c0_5] : memref<3x128x128xbf16, #tpu.memory_space<vmem>>, vector<1x128x128xbf16>
    %3 = vector.shape_cast %2 : vector<1x128x128xbf16> to vector<128x128xbf16>
    %cst = arith.constant dense<0.000000e+00> : vector<128x128xf32>
    %4 = tpu.matmul %1, %3, %cst {dimension_numbers = #tpu.dot_dimension_numbers<[1], [0], [0], [1], [0, 0, 1, 1], [], []>} : vector<128x128xbf16>, vector<128x128xbf16>, vector<128x128xf32> -> vector<128x128xf32>
    %5 = arith.truncf %4 : vector<128x128xf32> to vector<128x128xbf16>
    %cst_6 = arith.constant dense<0.000000e+00> : vector<128x128xf32>
    %6 = tpu.matmul %0, %5, %cst_6 {dimension_numbers = #tpu.dot_dimension_numbers<[1], [0], [0], [1], [0, 0, 1, 1], [], []>} : vector<128x128xbf16>, vector<128x128xbf16>, vector<128x128xf32> -> vector<128x128xf32>
    %c0_7 = arith.constant 0 : index
    %c0_8 = arith.constant 0 : index
    %c0_9 = arith.constant 0 : index
    %7 = vector.load %arg4[%c0_7, %c0_8, %c0_9] : memref<3x1x128xf32, #tpu.memory_space<vmem>>, vector<1x1x128xf32>
    %8 = vector.shape_cast %7 : vector<1x1x128xf32> to vector<1x128xf32>
    %9 = vector.broadcast %8 : vector<1x128xf32> to vector<128x128xf32>
    %10 = arith.addf %6, %9 : vector<128x128xf32>
    %cst_10 = arith.constant 0.000000e+00 : f32
    %11 = vector.broadcast %cst_10 : f32 to vector<128x128xf32>
    %12 = arith.maximumf %10, %11 : vector<128x128xf32>
    %13 = arith.truncf %12 : vector<128x128xf32> to vector<128x128xbf16>
    %c1 = arith.constant 1 : index
    %c0_11 = arith.constant 0 : index
    %c0_12 = arith.constant 0 : index
    %14 = vector.load %arg3[%c1, %c0_11, %c0_12] : memref<3x128x128xbf16, #tpu.memory_space<vmem>>, vector<1x128x128xbf16>
    %15 = vector.shape_cast %14 : vector<1x128x128xbf16> to vector<128x128xbf16>
    %cst_13 = arith.constant dense<0.000000e+00> : vector<128x128xf32>
    %16 = tpu.matmul %13, %15, %cst_13 {dimension_numbers = #tpu.dot_dimension_numbers<[1], [0], [0], [1], [0, 0, 1, 1], [], []>} : vector<128x128xbf16>, vector<128x128xbf16>, vector<128x128xf32> -> vector<128x128xf32>
    %17 = arith.truncf %16 : vector<128x128xf32> to vector<128x128xbf16>
    %cst_14 = arith.constant dense<0.000000e+00> : vector<128x128xf32>
    %18 = tpu.matmul %0, %17, %cst_14 {dimension_numbers = #tpu.dot_dimension_numbers<[1], [0], [0], [1], [0, 0, 1, 1], [], []>} : vector<128x128xbf16>, vector<128x128xbf16>, vector<128x128xf32> -> vector<128x128xf32>
    %c1_15 = arith.constant 1 : index
    %c0_16 = arith.constant 0 : index
    %c0_17 = arith.constant 0 : index
    %19 = vector.load %arg4[%c1_15, %c0_16, %c0_17] : memref<3x1x128xf32, #tpu.memory_space<vmem>>, vector<1x1x128xf32>
    %20 = vector.shape_cast %19 : vector<1x1x128xf32> to vector<1x128xf32>
    %21 = vector.broadcast %20 : vector<1x128xf32> to vector<128x128xf32>
    %22 = arith.addf %18, %21 : vector<128x128xf32>
    %cst_18 = arith.constant 0.000000e+00 : f32
    %23 = vector.broadcast %cst_18 : f32 to vector<128x128xf32>
    %24 = arith.maximumf %22, %23 : vector<128x128xf32>
    %25 = arith.truncf %24 : vector<128x128xf32> to vector<128x128xbf16>
    %c2 = arith.constant 2 : index
    %c0_19 = arith.constant 0 : index
    %c0_20 = arith.constant 0 : index
    %26 = vector.load %arg3[%c2, %c0_19, %c0_20] : memref<3x128x128xbf16, #tpu.memory_space<vmem>>, vector<1x128x128xbf16>
    %27 = vector.shape_cast %26 : vector<1x128x128xbf16> to vector<128x128xbf16>
    %cst_21 = arith.constant dense<0.000000e+00> : vector<128x128xf32>
    %28 = tpu.matmul %25, %27, %cst_21 {dimension_numbers = #tpu.dot_dimension_numbers<[1], [0], [0], [1], [0, 0, 1, 1], [], []>} : vector<128x128xbf16>, vector<128x128xbf16>, vector<128x128xf32> -> vector<128x128xf32>
    %29 = arith.truncf %28 : vector<128x128xf32> to vector<128x128xbf16>
    %cst_22 = arith.constant dense<0.000000e+00> : vector<128x128xf32>
    %30 = tpu.matmul %0, %29, %cst_22 {dimension_numbers = #tpu.dot_dimension_numbers<[1], [0], [0], [1], [0, 0, 1, 1], [], []>} : vector<128x128xbf16>, vector<128x128xbf16>, vector<128x128xf32> -> vector<128x128xf32>
    %c2_23 = arith.constant 2 : index
    %c0_24 = arith.constant 0 : index
    %c0_25 = arith.constant 0 : index
    %31 = vector.load %arg4[%c2_23, %c0_24, %c0_25] : memref<3x1x128xf32, #tpu.memory_space<vmem>>, vector<1x1x128xf32>
    %32 = vector.shape_cast %31 : vector<1x1x128xf32> to vector<1x128xf32>
    %33 = vector.broadcast %32 : vector<1x128xf32> to vector<128x128xf32>
    %34 = arith.addf %30, %33 : vector<128x128xf32>
    %cst_26 = arith.constant 0.000000e+00 : f32
    %35 = vector.broadcast %cst_26 : f32 to vector<128x128xf32>
    %36 = arith.maximumf %34, %35 : vector<128x128xf32>
    %37 = arith.truncf %36 : vector<128x128xf32> to vector<128x128xbf16>
    %c0_27 = arith.constant 0 : index
    %c0_28 = arith.constant 0 : index
    %38 = vector.load %arg5[%c0_27, %c0_28] : memref<8x128xbf16, #tpu.memory_space<vmem>>, vector<8x128xbf16>
    %cst_29 = arith.constant dense<0.000000e+00> : vector<8x128xf32>
    %39 = tpu.matmul %38, %37, %cst_29 {dimension_numbers = #tpu.dot_dimension_numbers<[1], [0], [0], [1], [0, 0, 1, 1], [], []>} : vector<8x128xbf16>, vector<128x128xbf16>, vector<8x128xf32> -> vector<8x128xf32>
    %40 = arith.truncf %39 : vector<8x128xf32> to vector<8x128xbf16>
    %c0_30 = arith.constant 0 : index
    %c0_31 = arith.constant 0 : index
    %41 = vector.load %arg6[%c0_30, %c0_31] : memref<128x128xbf16, #tpu.memory_space<vmem>>, vector<128x128xbf16>
    %cst_32 = arith.constant dense<0.000000e+00> : vector<8x128xf32>
    %42 = tpu.matmul %40, %41, %cst_32 {dimension_numbers = #tpu.dot_dimension_numbers<[1], [0], [0], [1], [0, 0, 1, 1], [], []>} : vector<8x128xbf16>, vector<128x128xbf16>, vector<8x128xf32> -> vector<8x128xf32>
    %c0_33 = arith.constant 0 : index
    %c0_34 = arith.constant 0 : index
    %43 = vector.load %arg7[%c0_33, %c0_34] : memref<1x128xf32, #tpu.memory_space<vmem>>, vector<1x128xf32>
    %44 = vector.broadcast %43 : vector<1x128xf32> to vector<8x128xf32>
    %45 = arith.addf %42, %44 : vector<8x128xf32>
    %46 = arith.negf %45 : vector<8x128xf32>
    %47 = math.exp %46 : vector<8x128xf32>
    %cst_35 = arith.constant 1.000000e+00 : f32
    %48 = vector.broadcast %cst_35 : f32 to vector<8x128xf32>
    %49 = arith.addf %48, %47 : vector<8x128xf32>
    %50 = arith.divf %48, %49 : vector<8x128xf32>
    %c0_36 = arith.constant 0 : index
    %c0_37 = arith.constant 0 : index
    %51 = vector.load %arg8[%c0_36, %c0_37] : memref<8x128xf32, #tpu.memory_space<vmem>>, vector<8x128xf32>
    tpu.vector_store %arg8[%c0_36, %c0_37], %50 {strides = array<i32>} : memref<8x128xf32, #tpu.memory_space<vmem>>, vector<8x128xf32>,
    return
  }
  func.func @transform_0(%arg0: i32) -> (i32, i32) {
    %c0_i32 = arith.constant 0 : i32
    %c0_i32_0 = arith.constant 0 : i32
    %c0_i32_1 = arith.constant 0 : i32
    return %c0_i32, %c0_i32_0 : i32, i32
  }
  func.func @transform_1(%arg0: i32) -> (i32, i32) {
    %c0_i32 = arith.constant 0 : i32
    %c0_i32_0 = arith.constant 0 : i32
    %c0_i32_1 = arith.constant 0 : i32
    return %c0_i32, %c0_i32_0 : i32, i32
  }
  func.func @transform_2(%arg0: i32) -> (i32, i32, i32) {
    %c0_i32 = arith.constant 0 : i32
    %c0_i32_0 = arith.constant 0 : i32
    %c0_i32_1 = arith.constant 0 : i32
    %c0_i32_2 = arith.constant 0 : i32
    return %c0_i32, %c0_i32_0, %c0_i32_1 : i32, i32, i32
  }
  func.func @transform_3(%arg0: i32) -> (i32, i32, i32) {
    %c0_i32 = arith.constant 0 : i32
    %c0_i32_0 = arith.constant 0 : i32
    %c0_i32_1 = arith.constant 0 : i32
    %c0_i32_2 = arith.constant 0 : i32
    return %c0_i32, %c0_i32_0, %c0_i32_1 : i32, i32, i32
  }
  func.func @transform_4(%arg0: i32) -> (i32, i32) {
    %c0_i32 = arith.constant 0 : i32
    %c0_i32_0 = arith.constant 0 : i32
    %c0_i32_1 = arith.constant 0 : i32
    return %c0_i32, %c0_i32_0 : i32, i32
  }
  func.func @transform_5(%arg0: i32) -> (i32, i32) {
    %c0_i32 = arith.constant 0 : i32
    %c0_i32_0 = arith.constant 0 : i32
    %c0_i32_1 = arith.constant 0 : i32
    return %c0_i32, %c0_i32_0 : i32, i32
  }
  func.func @transform_6(%arg0: i32) -> (i32, i32) {
    %c0_i32 = arith.constant 0 : i32
    %c0_i32_0 = arith.constant 0 : i32
    %c0_i32_1 = arith.constant 0 : i32
    return %c0_i32, %c0_i32_0 : i32, i32
  }
  func.func @transform_7(%arg0: i32) -> (i32, i32) {
    %c0_i32 = arith.constant 0 : i32
    %c0_i32_0 = arith.constant 0 : i32
    %c0_i32_1 = arith.constant 0 : i32
    return %c0_i32, %c0_i32_0 : i32, i32
  }
}

</mosaic_0001>

<bundles_post_ra>
// kernel: tpu_custom_call.1
= control target key start
LH: loop header
LB: loop body
LE: loop exit
PB: predicated region body
PF: predicated region fallthrough
CT: control target
= control target key end

     0   :  { %12 = vsyncpa [#allocation3], 0  ;;  %s2071_s0 = inlined_call_operand.hbm [shape: bf16[128,128], index: 0, kind: input, shape index: {}]   ;;  %s2072_s1 = inlined_call_operand.hbm [shape: bf16[128,128], index: 1, kind: input, shape index: {}]   ;;  %s2073_s2 = inlined_call_operand.hbm [shape: bf16[3,128,128], index: 2, kind: input, shape index: {}]   ;;  %s2074_s3 = inlined_call_operand.vmem [shape: f32[3,1,128], index: 3, kind: input, shape index: {}]   ;;  %s2075_s4 = inlined_call_operand.vmem [shape: bf16[8,128], index: 4, kind: input, shape index: {}]   ;;  %s2076_s5 = inlined_call_operand.hbm [shape: bf16[128,128], index: 5, kind: input, shape index: {}]   ;;  %s2077_s6 = inlined_call_operand.vmem [shape: f32[1,128], index: 6, kind: input, shape index: {}]   ;;  %s2078_s7 = inlined_call_operand.hbm [shape: f32[8,128], index: 7, kind: output, shape index: {}]  }
   0x1   :  { %13 = vsyncpa [#allocation6], 0 }
   0x2   :  { %14 = vsyncpa [#allocation9], 0 }
   0x3   :  { %15 = vsyncpa [#allocation4], 0  ;;  %s1863_s24 = smov [#allocation5]   ;;  %s1864_s26 = smov [#allocation2]  }
   0x4   :  { %s33_s25 = sshll.u32 %s1863_s24, 4  ;;  %s21_s27 = sshll.u32 %s1864_s26, 4  ;;  %s34_s25 = int_to_ptr.vmem [resolvable:$true] %s33_s25  ;;  %s1912_s27 = int_to_ptr.vmem [resolvable:$true] %s21_s27 }
   0x5   :  { %s1745_s30 = scalar_lea.hbm %s2072_s1, 1024 }
   0x6   :  { %p1746_p0 = scmp.ne.s32.totalorder %s2072_s1, %s1745_s30  ;;  %p1749_p1 = scmp.lt.u32.totalorder %s1745_s30, %s2072_s1 }
   0x8   :  { %p1751_p2 = pnand %p1749_p1, %p1746_p0 }
   0xa   :  { %1754 = shalt.err (!%p1751_p2)
}
   0xb   :  { %s1755_s12 = scalar_lea.vmem %s34_s25, 1024  ;;  %p1760_p4 = scmp.lt.s32.totalorder %s34_s25, %s34_s25 }
   0xc   :  { %p1756_p3 = scmp.ne.s32.totalorder %s34_s25, %s1755_s12  ;;  %p1761_p5 = scmp.lt.s32.totalorder %s1755_s12, %s1755_s12 }
   0xe   :  { %p1762_p6 = por %p1761_p5, %p1760_p4 }
  0x10   :  { %p1763_p7 = pnand %p1762_p6, %p1756_p3 }
  0x12   :  { %1766 = shalt.err (!%p1763_p7)
}
  0x13   :  { %s1865_s13 = smov 64   ;;  %s1866_s14 = smov 4  }
  0x14   :  { %39 = dma.hbm_to_vmem [thread:$0]  %s2072_s1, 1024, %s34_s25, [#allocation6], %s1865_s13, %s1865_s13, %s1866_s14  }
  0x15   :  { %s1767_s19 = scalar_lea.hbm %s2071_s0, 1024 }
  0x16   :  { %p1768_p8 = scmp.ne.s32.totalorder %s2071_s0, %s1767_s19  ;;  %p1771_p9 = scmp.lt.u32.totalorder %s1767_s19, %s2071_s0 }
  0x18   :  { %p1773_p10 = pnand %p1771_p9, %p1768_p8 }
  0x1a   :  { %1776 = shalt.err (!%p1773_p10)
}
  0x1b   :  { %s1777_s24 = scalar_lea.vmem %s1912_s27, 1024  ;;  %p1782_p12 = scmp.lt.s32.totalorder %s1912_s27, %s1912_s27 }
  0x1c   :  { %p1778_p11 = scmp.ne.s32.totalorder %s1912_s27, %s1777_s24  ;;  %p1783_p13 = scmp.lt.s32.totalorder %s1777_s24, %s1777_s24 }
  0x1e   :  { %p1784_p0 = por %p1783_p13, %p1782_p12 }
  0x20   :  { %p1785_p1 = pnand %p1784_p0, %p1778_p11 }
  0x22   :  { %1788 = shalt.err (!%p1785_p1)
}
  0x23   :  { %27 = dma.hbm_to_vmem [thread:$0]  %s2071_s0, 1024, %s1912_s27, [#allocation3], %s1865_s13, %s1865_s13, %s1866_s14  }
  0x24   :  { %s1867_s26 = smov [#allocation7]   ;;  %s1868_s29 = smov [#allocation8]  }
  0x25   :  { %s45_s28 = sshll.u32 %s1867_s26, 4  ;;  %s61_s30 = sshll.u32 %s1868_s29, 4  ;;  %s46_s28 = int_to_ptr.vmem [resolvable:$true] %s45_s28  ;;  %s1949_s30 = int_to_ptr.vmem [resolvable:$true] %s61_s30 }
  0x26   :  { %s1789_s10 = scalar_lea.hbm %s2073_s2, 3072 }
  0x27   :  { %p1790_p2 = scmp.ne.s32.totalorder %s2073_s2, %s1789_s10  ;;  %p1793_p3 = scmp.lt.u32.totalorder %s1789_s10, %s2073_s2 }
  0x29   :  { %p1795_p4 = pnand %p1793_p3, %p1790_p2 }
  0x2b   :  { %1798 = shalt.err (!%p1795_p4)
}
  0x2c   :  { %s1799_s0 = scalar_lea.vmem %s46_s28, 3072  ;;  %p1804_p6 = scmp.lt.s32.totalorder %s46_s28, %s46_s28 }
  0x2d   :  { %p1800_p5 = scmp.ne.s32.totalorder %s46_s28, %s1799_s0  ;;  %p1805_p7 = scmp.lt.s32.totalorder %s1799_s0, %s1799_s0 }
  0x2f   :  { %p1806_p8 = por %p1805_p7, %p1804_p6 }
  0x31   :  { %p1807_p9 = pnand %p1806_p8, %p1800_p5 }
  0x33   :  { %1810 = shalt.err (!%p1807_p9)
}
  0x34   :  { %51 = dma.hbm_to_vmem [thread:$0]  %s2073_s2, 3072, %s46_s28, [#allocation6], %s1865_s13, %s1865_s13, %s1866_s14  }
  0x35   :  { %s1811_s20 = scalar_lea.hbm %s2076_s5, 1024 }
  0x36   :  { %p1812_p10 = scmp.ne.s32.totalorder %s2076_s5, %s1811_s20  ;;  %p1815_p11 = scmp.lt.u32.totalorder %s1811_s20, %s2076_s5 }
  0x38   :  { %p1817_p12 = pnand %p1815_p11, %p1812_p10 }
  0x3a   :  { %1820 = shalt.err (!%p1817_p12)
}
  0x3b   :  { %s1821_s1 = scalar_lea.vmem %s1949_s30, 1024  ;;  %p1826_p0 = scmp.lt.s32.totalorder %s1949_s30, %s1949_s30 }
  0x3c   :  { %p1822_p13 = scmp.ne.s32.totalorder %s1949_s30, %s1821_s1  ;;  %p1827_p1 = scmp.lt.s32.totalorder %s1821_s1, %s1821_s1 }
  0x3e   :  { %p1828_p2 = por %p1827_p1, %p1826_p0 }
  0x40   :  { %p1829_p3 = pnand %p1828_p2, %p1822_p13 }
  0x42   :  { %1832 = shalt.err (!%p1829_p3)
}
  0x43   :  { %67 = dma.hbm_to_vmem [thread:$0]  %s2076_s5, 1024, %s1949_s30, [#allocation9], %s1865_s13, %s1865_s13, %s1866_s14  }
  0x44   :  { %1855 = dma.done.wait [#allocation3], 1024  }
  0x45   :  { %1856 = vsyncadd [#allocation3], 4294966272 }
  0x46   :  { %1857 = dma.done.wait [#allocation6], 4096  }
  0x47   :  { %1858 = vsyncadd [#allocation6], 4294963200 }
  0x48   :  { %1859 = dma.done.wait [#allocation9], 1024  }
  0x49   :  { %1860 = vsyncadd [#allocation9], 4294966272  ;;  %v1693_v0 = vld [vmem:[#allocation7] sm:$0xff]   ;;  %v1694_v1 = vld [vmem:[#allocation7 + $0x8] sm:$0xff]   ;;  %vm1870_vm0 = vmmov 0  }
  0x4a   :  { %1452 = vmatprep.subr.bf16.mxu0 %v1693_v0  ;;  %v1695_v2 = vld [vmem:[#allocation7 + $0x10] sm:$0xff]   ;;  %v1696_v3 = vld [vmem:[#allocation7 + $0x18] sm:$0xff]   ;;  %v1701_v4 = vld [vmem:[#allocation2] sm:$0xff]  }
  0x4b   :  { %1453 = vmatpush3.bf16.msra.mxu0 %v1693_v0  ;;  %1468 = vmatprep.mubr.bf16.mxu0 %v1701_v4  ;;  %v1697_v5 = vld [vmem:[#allocation7 + $0x20] sm:$0xff]   ;;  %v1698_v6 = vld [vmem:[#allocation7 + $0x28] sm:$0xff]   ;;  %v1699_v7 = vld [vmem:[#allocation7 + $0x30] sm:$0xff]  }
  0x4c   :  { %1454 = vmatprep.subr.bf16.mxu0 %v1694_v1  ;;  %v1700_v8 = vld [vmem:[#allocation7 + $0x38] sm:$0xff]   ;;  %v1702_v9 = vld [vmem:[#allocation2 + $0x8] sm:$0xff]   ;;  %v1703_v10 = vld [vmem:[#allocation2 + $0x10] sm:$0xff]  }
  0x4d   :  { %v1704_v11 = vld [vmem:[#allocation2 + $0x18] sm:$0xff]   ;;  %v1705_v12 = vld [vmem:[#allocation2 + $0x20] sm:$0xff]   ;;  %v1706_v13 = vld [vmem:[#allocation2 + $0x28] sm:$0xff]  }
  0x4e   :  { %v1707_v14 = vld [vmem:[#allocation2 + $0x30] sm:$0xff]   ;;  %v1708_v15 = vld [vmem:[#allocation2 + $0x38] sm:$0xff]   ;;  %v1986_v16 = vld [vmem:[#allocation5] sm:$0xff]  }
  0x4f   :  { %1455 = vmatpush3.bf16.msra.mxu0 %v1694_v1  ;;  %1500 = vmatprep.mubr.bf16.mxu1 %v1986_v16  ;;  %v1717_v17 = vld [vmem:[#allocation7 + $0x40] sm:$0xff]   ;;  %v1718_v18 = vld [vmem:[#allocation7 + $0x48] sm:$0xff]   ;;  %v1719_v19 = vld [vmem:[#allocation7 + $0x50] sm:$0xff]  }
  0x50   :  { %1456 = vmatprep.subr.bf16.mxu0 %v1695_v2  ;;  %v1720_v20 = vld [vmem:[#allocation7 + $0x58] sm:$0xff]   ;;  %v1721_v21 = vld [vmem:[#allocation7 + $0x60] sm:$0xff]   ;;  %v1722_v22 = vld [vmem:[#allocation7 + $0x68] sm:$0xff]  }
  0x51   :  { %v1989_v47 = vld [vmem:[#allocation5 + $0x8] sm:$0xff]   ;;  %v1991_v48 = vld [vmem:[#allocation5 + $0x10] sm:$0xff]   ;;  %v1995_v49 = vld [vmem:[#allocation5 + $0x18] sm:$0xff]  }
  0x52   :  { %v1997_v50 = vld [vmem:[#allocation5 + $0x20] sm:$0xff]   ;;  %v2001_v51 = vld [vmem:[#allocation5 + $0x28] sm:$0xff]   ;;  %v2003_v52 = vld [vmem:[#allocation5 + $0x30] sm:$0xff]  }
  0x53   :  { %1457 = vmatpush3.bf16.msra.mxu0 %v1695_v2  ;;  %v2007_v53 = vld [vmem:[#allocation5 + $0x38] sm:$0xff]   ;;  %v1723_v54 = vld [vmem:[#allocation7 + $0x70] sm:$0xff]   ;;  %v1299_v56 = vld [vmem:[%s2074_s3] ss:$0 sm:$0xff] }
  0x54   :  { %1458 = vmatprep.subr.bf16.mxu0 %v1696_v3  ;;  %v1724_v55 = vld [vmem:[#allocation7 + $0x78] sm:$0xff]  }
  0x57   :  { %1459 = vmatpush3.bf16.msra.mxu0 %v1696_v3 }
  0x58   :  { %1460 = vmatprep.subr.bf16.mxu0 %v1697_v5 }
  0x5b   :  { %1461 = vmatpush3.bf16.msra.mxu0 %v1697_v5 }
  0x5c   :  { %1462 = vmatprep.subr.bf16.mxu0 %v1698_v6 }
  0x5f   :  { %1463 = vmatpush3.bf16.msra.mxu0 %v1698_v6 }
  0x60   :  { %1464 = vmatprep.subr.bf16.mxu0 %v1699_v7 }
  0x63   :  { %1465 = vmatpush3.bf16.msra.mxu0 %v1699_v7 }
  0x64   :  { %1466 = vmatprep.subr.bf16.mxu0 %v1700_v8 }
  0x67   :  { %1467 = vmatpush3.bf16.msra.mxu0 %v1700_v8 }
  0x68   :  { %1516 = vmatprep.subr.bf16.mxu0 %v1717_v17 }
  0x6a   :  { %1469 = vmatmul.mubr.bf16.vlgmr.msra.gmra.mrb[0].mxu0 %v1702_v9 }
  0x6b   :  { %1472 = vmatprep.mubr.bf16.mxu0 %v1703_v10  ;;  %1517 = vmatpush3.bf16.msra.mxu0 %v1717_v17 }
  0x6c   :  { %1518 = vmatprep.subr.bf16.mxu0 %v1718_v18 }
  0x6f   :  { %1519 = vmatpush3.bf16.msra.mxu0 %v1718_v18 }
  0x70   :  { %1520 = vmatprep.subr.bf16.mxu0 %v1719_v19 }
  0x72   :  { %1473 = vmatmul.mubr.bf16.gmra.mrb[4].mxu0 %v1704_v11 }
  0x73   :  { %1476 = vmatprep.mubr.bf16.mxu0 %v1705_v12  ;;  %1521 = vmatpush3.bf16.msra.mxu0 %v1719_v19 }
  0x74   :  { %1522 = vmatprep.subr.bf16.mxu0 %v1720_v20 }
  0x77   :  { %1523 = vmatpush3.bf16.msra.mxu0 %v1720_v20 }
  0x78   :  { %1524 = vmatprep.subr.bf16.mxu0 %v1721_v21 }
  0x7a   :  { %1477 = vmatmul.mubr.bf16.gmra.mrb[8].mxu0 %v1706_v13 }
  0x7b   :  { %1480 = vmatprep.mubr.bf16.mxu0 %v1707_v14  ;;  %1525 = vmatpush3.bf16.msra.mxu0 %v1721_v21 }
  0x7c   :  { %1526 = vmatprep.subr.bf16.mxu0 %v1722_v22 }
  0x7f   :  { %1527 = vmatpush3.bf16.msra.mxu0 %v1722_v22 }
  0x80   :  { %1528 = vmatprep.subr.bf16.mxu0 %v1723_v54 }
  0x82   :  { %1481 = vmatmul.mubr.bf16.gmra.mrb[12].mxu0 %v1708_v15 }
  0x83   :  { %1529 = vmatpush3.bf16.msra.mxu0 %v1723_v54 }
  0x84   :  { %1530 = vmatprep.subr.bf16.mxu0 %v1724_v55 }
  0x87   :  { %1531 = vmatpush3.bf16.msra.mxu0 %v1724_v55 }
 0x13d   :  { %v1470_v23 = vpop.f32.mrb[0].mxu0 }
 0x13e   :  { %v261_v24 = vpop.f32.mrb[1].mxu0 }
 0x13f   :  { %v1471_v25 = vpop.f32.mrb[2].mxu0 }
 0x140   :  { %v325_v26 = vpack.c.bf16 %v1471_v25, %v1470_v23  ;;  %v264_v27 = vpop.f32.mrb[3].mxu0 }
 0x141   :  { %v324_v28 = vpack.c.bf16 %v264_v27, %v261_v24 }
 0x143   :  { %1484 = vmatprep.subr.bf16.mxu1 %v324_v28 }
 0x144   :  { %1485 = vmatpush3.bf16.msra.mxu1 %v324_v28 }
 0x145   :  { %v1474_v29 = vpop.f32.mrb[4].mxu0  ;;  %1486 = vmatprep.subr.bf16.mxu1 %v325_v26 }
 0x146   :  { %v277_v30 = vpop.f32.mrb[5].mxu0 }
 0x147   :  { %v1475_v31 = vpop.f32.mrb[6].mxu0 }
 0x148   :  { %v327_v32 = vpack.c.bf16 %v1475_v31, %v1474_v29  ;;  %v280_v33 = vpop.f32.mrb[7].mxu0  ;;  %1487 = vmatpush3.bf16.msra.mxu1 %v325_v26 }
 0x149   :  { %v326_v34 = vpack.c.bf16 %v280_v33, %v277_v30 }
 0x14b   :  { %1488 = vmatprep.subr.bf16.mxu1 %v326_v34 }
 0x14c   :  { %1489 = vmatpush3.bf16.msra.mxu1 %v326_v34 }
 0x14d   :  { %v1478_v35 = vpop.f32.mrb[8].mxu0  ;;  %1490 = vmatprep.subr.bf16.mxu1 %v327_v32 }
 0x14e   :  { %v293_v36 = vpop.f32.mrb[9].mxu0 }
 0x14f   :  { %v1479_v37 = vpop.f32.mrb[10].mxu0 }
 0x150   :  { %v329_v38 = vpack.c.bf16 %v1479_v37, %v1478_v35  ;;  %v296_v39 = vpop.f32.mrb[11].mxu0  ;;  %1491 = vmatpush3.bf16.msra.mxu1 %v327_v32 }
 0x151   :  { %v328_v40 = vpack.c.bf16 %v296_v39, %v293_v36 }
 0x153   :  { %1492 = vmatprep.subr.bf16.mxu1 %v328_v40 }
 0x154   :  { %1493 = vmatpush3.bf16.msra.mxu1 %v328_v40 }
 0x155   :  { %v1482_v41 = vpop.f32.mrb[12].mxu0  ;;  %1494 = vmatprep.subr.bf16.mxu1 %v329_v38 }
 0x156   :  { %v309_v42 = vpop.f32.mrb[13].mxu0 }
 0x157   :  { %v1483_v43 = vpop.f32.mrb[14].mxu0 }
 0x158   :  { %v331_v44 = vpack.c.bf16 %v1483_v43, %v1482_v41  ;;  %v312_v45 = vpop.f32.mrb[15].mxu0  ;;  %1495 = vmatpush3.bf16.msra.mxu1 %v329_v38 }
 0x159   :  { %v330_v46 = vpack.c.bf16 %v312_v45, %v309_v42 }
 0x15b   :  { %1496 = vmatprep.subr.bf16.mxu1 %v330_v46 }
 0x15c   :  { %1497 = vmatpush3.bf16.msra.mxu1 %v330_v46 }
 0x15d   :  { %1498 = vmatprep.subr.bf16.mxu1 %v331_v44 }
 0x160   :  { %1499 = vmatpush3.bf16.msra.mxu1 %v331_v44 }
 0x163   :  { %1501 = vmatmul.mubr.bf16.vlgmr.msra.gmra.mrb[0].mxu1 %v1989_v47 }
 0x164   :  { %1504 = vmatprep.mubr.bf16.mxu1 %v1991_v48 }
 0x16b   :  { %1505 = vmatmul.mubr.bf16.gmra.mrb[4].mxu1 %v1995_v49 }
 0x16c   :  { %1508 = vmatprep.mubr.bf16.mxu1 %v1997_v50 }
 0x173   :  { %1509 = vmatmul.mubr.bf16.gmra.mrb[8].mxu1 %v2001_v51 }
 0x174   :  { %1512 = vmatprep.mubr.bf16.mxu1 %v2003_v52 }
 0x17b   :  { %1513 = vmatmul.mubr.bf16.gmra.mrb[12].mxu1 %v2007_v53 }
 0x17c   :  { %1564 = vmatprep.mubr.bf16.mxu1 %v1986_v16 }
 0x236   :  { %v1502_v57 = vpop.f32.mrb[0].mxu1 }
 0x237   :  { %v430_v58 = vadd.f32 %v1502_v57, %v1299_v56  ;;  %v421_v59 = vpop.f32.mrb[1].mxu1 }
 0x238   :  { %v422_v60 = vadd.f32 %v1299_v56, %v421_v59  ;;  %v1503_v61 = vpop.f32.mrb[2].mxu1  ;;  %v1726_v59 = vld [vmem:[#allocation7 + $0x88] sm:$0xff]  }
 0x239   :  { %v433_v62 = vadd.f32 %v1503_v61, %v1299_v56  ;;  %v424_v63 = vpop.f32.mrb[3].mxu1  ;;  %v486_v1 = vmax.f32 %v430_v58, 0.0  ;;  %v1725_v58 = vld [vmem:[#allocation7 + $0x80] sm:$0xff]   ;;  %v1728_v61 = vld [vmem:[#allocation7 + $0x98] sm:$0xff]  }
 0x23a   :  { %v425_v0 = vadd.f32 %v1299_v56, %v424_v63  ;;  %v484_v3 = vmax.f32 %v422_v60, 0.0  ;;  %1580 = vmatprep.subr.bf16.mxu0 %v1725_v58  ;;  %v1727_v60 = vld [vmem:[#allocation7 + $0x90] sm:$0xff]  }
 0x23b   :  { %v487_v2 = vmax.f32 %v433_v62, 0.0  ;;  %v1730_v62 = vld [vmem:[#allocation7 + $0xa8] sm:$0xff]  }
 0x23c   :  { %v485_v4 = vmax.f32 %v425_v0, 0.0 }
 0x23d   :  { %v501_v5 = vpack.c.bf16 %v487_v2, %v486_v1 }
 0x23e   :  { %v500_v6 = vpack.c.bf16 %v485_v4, %v484_v3  ;;  %v1506_v7 = vpop.f32.mrb[4].mxu1 }
 0x23f   :  { %v446_v8 = vadd.f32 %v1506_v7, %v1299_v56  ;;  %v437_v9 = vpop.f32.mrb[5].mxu1 }
 0x240   :  { %v438_v10 = vadd.f32 %v1299_v56, %v437_v9  ;;  %v1507_v11 = vpop.f32.mrb[6].mxu1  ;;  %1532 = vmatprep.mubr.bf16.mxu0 %v500_v6 }
 0x241   :  { %v449_v12 = vadd.f32 %v1507_v11, %v1299_v56  ;;  %v440_v13 = vpop.f32.mrb[7].mxu1  ;;  %1533 = vmatmul.mubr.bf16.vlgmr.msra.gmra.mrb[16].mxu0 %v501_v5  ;;  %v490_v15 = vmax.f32 %v446_v8, 0.0 }
 0x242   :  { %v441_v14 = vadd.f32 %v1299_v56, %v440_v13  ;;  %v488_v18 = vmax.f32 %v438_v10, 0.0  ;;  %1581 = vmatpush3.bf16.msra.mxu0 %v1725_v58 }
 0x243   :  { %v491_v17 = vmax.f32 %v449_v12, 0.0  ;;  %1582 = vmatprep.subr.bf16.mxu0 %v1726_v59 }
 0x244   :  { %v489_v19 = vmax.f32 %v441_v14, 0.0 }
 0x245   :  { %v503_v20 = vpack.c.bf16 %v491_v17, %v490_v15 }
 0x246   :  { %v502_v21 = vpack.c.bf16 %v489_v19, %v488_v18  ;;  %v1510_v22 = vpop.f32.mrb[8].mxu1  ;;  %1583 = vmatpush3.bf16.msra.mxu0 %v1726_v59 }
 0x247   :  { %v462_v23 = vadd.f32 %v1510_v22, %v1299_v56  ;;  %v453_v24 = vpop.f32.mrb[9].mxu1  ;;  %1584 = vmatprep.subr.bf16.mxu0 %v1727_v60 }
 0x248   :  { %v454_v25 = vadd.f32 %v1299_v56, %v453_v24  ;;  %v1511_v26 = vpop.f32.mrb[10].mxu1  ;;  %1536 = vmatprep.mubr.bf16.mxu0 %v502_v21  ;;  %v1731_v24 = vld [vmem:[#allocation7 + $0xb0] sm:$0xff]  }
 0x249   :  { %v465_v27 = vadd.f32 %v1511_v26, %v1299_v56  ;;  %v456_v28 = vpop.f32.mrb[11].mxu1  ;;  %1537 = vmatmul.mubr.bf16.gmra.mrb[20].mxu0 %v503_v20  ;;  %v494_v30 = vmax.f32 %v462_v23, 0.0  ;;  %v1317_v26 = vld [vmem:[%s2074_s3 + $0x1] ss:$0 sm:$0xff] }
 0x24a   :  { %v457_v29 = vadd.f32 %v1299_v56, %v456_v28  ;;  %v492_v32 = vmax.f32 %v454_v25, 0.0  ;;  %1585 = vmatpush3.bf16.msra.mxu0 %v1727_v60  ;;  %v1732_v25 = vld [vmem:[#allocation7 + $0xb8] sm:$0xff]  }
 0x24b   :  { %v495_v31 = vmax.f32 %v465_v27, 0.0  ;;  %1586 = vmatprep.subr.bf16.mxu0 %v1728_v61 }
 0x24c   :  { %v493_v33 = vmax.f32 %v457_v29, 0.0 }
 0x24d   :  { %v505_v34 = vpack.c.bf16 %v495_v31, %v494_v30 }
 0x24e   :  { %v504_v35 = vpack.c.bf16 %v493_v33, %v492_v32  ;;  %v1514_v36 = vpop.f32.mrb[12].mxu1  ;;  %1587 = vmatpush3.bf16.msra.mxu0 %v1728_v61 }
 0x24f   :  { %v478_v37 = vadd.f32 %v1514_v36, %v1299_v56  ;;  %v469_v38 = vpop.f32.mrb[13].mxu1 }
 0x250   :  { %v470_v39 = vadd.f32 %v1299_v56, %v469_v38  ;;  %v1515_v40 = vpop.f32.mrb[14].mxu1  ;;  %1540 = vmatprep.mubr.bf16.mxu0 %v504_v35 }
 0x251   :  { %v481_v41 = vadd.f32 %v1515_v40, %v1299_v56  ;;  %v472_v42 = vpop.f32.mrb[15].mxu1  ;;  %1541 = vmatmul.mubr.bf16.gmra.mrb[24].mxu0 %v505_v34  ;;  %v498_v44 = vmax.f32 %v478_v37, 0.0 }
 0x252   :  { %v473_v43 = vadd.f32 %v1299_v56, %v472_v42  ;;  %v496_v46 = vmax.f32 %v470_v39, 0.0  ;;  %v1729_v56 = vld [vmem:[#allocation7 + $0xa0] sm:$0xff]  }
 0x253   :  { %v499_v45 = vmax.f32 %v481_v41, 0.0  ;;  %1588 = vmatprep.subr.bf16.mxu0 %v1729_v56 }
 0x254   :  { %v497_v54 = vmax.f32 %v473_v43, 0.0  ;;  %1589 = vmatpush3.bf16.msra.mxu0 %v1729_v56 }
 0x255   :  { %v507_v55 = vpack.c.bf16 %v499_v45, %v498_v44  ;;  %1590 = vmatprep.subr.bf16.mxu0 %v1730_v62 }
 0x256   :  { %v506_v57 = vpack.c.bf16 %v497_v54, %v496_v46 }
 0x258   :  { %1544 = vmatprep.mubr.bf16.mxu0 %v506_v57  ;;  %1591 = vmatpush3.bf16.msra.mxu0 %v1730_v62 }
 0x259   :  { %1545 = vmatmul.mubr.bf16.gmra.mrb[28].mxu0 %v507_v55  ;;  %1592 = vmatprep.subr.bf16.mxu0 %v1731_v24 }
 0x25c   :  { %1593 = vmatpush3.bf16.msra.mxu0 %v1731_v24 }
 0x25d   :  { %1594 = vmatprep.subr.bf16.mxu0 %v1732_v25 }
 0x260   :  { %1595 = vmatpush3.bf16.msra.mxu0 %v1732_v25 }
 0x314   :  { %v1534_v63 = vpop.f32.mrb[16].mxu0 }
 0x315   :  { %v607_v0 = vpop.f32.mrb[17].mxu0 }
 0x316   :  { %v1535_v1 = vpop.f32.mrb[18].mxu0 }
 0x317   :  { %v671_v2 = vpack.c.bf16 %v1535_v1, %v1534_v63  ;;  %v610_v3 = vpop.f32.mrb[19].mxu0 }
 0x318   :  { %v670_v4 = vpack.c.bf16 %v610_v3, %v607_v0 }
 0x31a   :  { %1548 = vmatprep.subr.bf16.mxu1 %v670_v4 }
 0x31b   :  { %1549 = vmatpush3.bf16.msra.mxu1 %v670_v4 }
 0x31c   :  { %v1538_v5 = vpop.f32.mrb[20].mxu0  ;;  %1550 = vmatprep.subr.bf16.mxu1 %v671_v2 }
 0x31d   :  { %v623_v6 = vpop.f32.mrb[21].mxu0 }
 0x31e   :  { %v1539_v7 = vpop.f32.mrb[22].mxu0 }
 0x31f   :  { %v673_v8 = vpack.c.bf16 %v1539_v7, %v1538_v5  ;;  %v626_v9 = vpop.f32.mrb[23].mxu0  ;;  %1551 = vmatpush3.bf16.msra.mxu1 %v671_v2 }
 0x320   :  { %v672_v10 = vpack.c.bf16 %v626_v9, %v623_v6 }
 0x322   :  { %1552 = vmatprep.subr.bf16.mxu1 %v672_v10 }
 0x323   :  { %1553 = vmatpush3.bf16.msra.mxu1 %v672_v10 }
 0x324   :  { %v1542_v11 = vpop.f32.mrb[24].mxu0  ;;  %1554 = vmatprep.subr.bf16.mxu1 %v673_v8 }
 0x325   :  { %v639_v12 = vpop.f32.mrb[25].mxu0 }
 0x326   :  { %v1543_v13 = vpop.f32.mrb[26].mxu0 }
 0x327   :  { %v675_v14 = vpack.c.bf16 %v1543_v13, %v1542_v11  ;;  %v642_v15 = vpop.f32.mrb[27].mxu0  ;;  %1555 = vmatpush3.bf16.msra.mxu1 %v673_v8 }
 0x328   :  { %v674_v17 = vpack.c.bf16 %v642_v15, %v639_v12 }
 0x32a   :  { %1556 = vmatprep.subr.bf16.mxu1 %v674_v17 }
 0x32b   :  { %1557 = vmatpush3.bf16.msra.mxu1 %v674_v17 }
 0x32c   :  { %v1546_v18 = vpop.f32.mrb[28].mxu0  ;;  %1558 = vmatprep.subr.bf16.mxu1 %v675_v14 }
 0x32d   :  { %v655_v19 = vpop.f32.mrb[29].mxu0 }
 0x32e   :  { %v1547_v20 = vpop.f32.mrb[30].mxu0 }
 0x32f   :  { %v677_v21 = vpack.c.bf16 %v1547_v20, %v1546_v18  ;;  %v658_v22 = vpop.f32.mrb[31].mxu0  ;;  %1559 = vmatpush3.bf16.msra.mxu1 %v675_v14 }
 0x330   :  { %v676_v23 = vpack.c.bf16 %v658_v22, %v655_v19 }
 0x332   :  { %1560 = vmatprep.subr.bf16.mxu1 %v676_v23 }
 0x333   :  { %1561 = vmatpush3.bf16.msra.mxu1 %v676_v23 }
 0x334   :  { %1562 = vmatprep.subr.bf16.mxu1 %v677_v21 }
 0x337   :  { %1563 = vmatpush3.bf16.msra.mxu1 %v677_v21 }
 0x33a   :  { %1565 = vmatmul.mubr.bf16.vlgmr.msra.gmra.mrb[16].mxu1 %v1989_v47 }
 0x33b   :  { %1568 = vmatprep.mubr.bf16.mxu1 %v1991_v48 }
 0x342   :  { %1569 = vmatmul.mubr.bf16.gmra.mrb[20].mxu1 %v1995_v49 }
 0x343   :  { %1572 = vmatprep.mubr.bf16.mxu1 %v1997_v50 }
 0x34a   :  { %1573 = vmatmul.mubr.bf16.gmra.mrb[24].mxu1 %v2001_v51 }
 0x34b   :  { %1576 = vmatprep.mubr.bf16.mxu1 %v2003_v52 }
 0x352   :  { %1577 = vmatmul.mubr.bf16.gmra.mrb[28].mxu1 %v2007_v53 }
 0x353   :  { %1628 = vmatprep.mubr.bf16.mxu1 %v1986_v16 }
 0x40d   :  { %v1566_v27 = vpop.f32.mrb[16].mxu1 }
 0x40e   :  { %v729_v28 = vadd.f32 %v1566_v27, %v1317_v26  ;;  %v720_v29 = vpop.f32.mrb[17].mxu1 }
 0x40f   :  { %v721_v30 = vadd.f32 %v1317_v26, %v720_v29  ;;  %v1567_v31 = vpop.f32.mrb[18].mxu1 }
 0x410   :  { %v732_v32 = vadd.f32 %v1567_v31, %v1317_v26  ;;  %v723_v33 = vpop.f32.mrb[19].mxu1  ;;  %v785_v35 = vmax.f32 %v729_v28, 0.0 }
 0x411   :  { %v724_v34 = vadd.f32 %v1317_v26, %v723_v33  ;;  %v783_v36 = vmax.f32 %v721_v30, 0.0 }
 0x412   :  { %v786_v16 = vmax.f32 %v732_v32, 0.0 }
 0x413   :  { %v784_v37 = vmax.f32 %v724_v34, 0.0 }
 0x414   :  { %v800_v38 = vpack.c.bf16 %v786_v16, %v785_v35 }
 0x415   :  { %v799_v39 = vpack.c.bf16 %v784_v37, %v783_v36  ;;  %v1570_v40 = vpop.f32.mrb[20].mxu1 }
 0x416   :  { %v745_v41 = vadd.f32 %v1570_v40, %v1317_v26  ;;  %v736_v42 = vpop.f32.mrb[21].mxu1 }
 0x417   :  { %v737_v43 = vadd.f32 %v1317_v26, %v736_v42  ;;  %v1571_v44 = vpop.f32.mrb[22].mxu1  ;;  %1596 = vmatprep.mubr.bf16.mxu0 %v799_v39 }
 0x418   :  { %v748_v45 = vadd.f32 %v1571_v44, %v1317_v26  ;;  %v739_v46 = vpop.f32.mrb[23].mxu1  ;;  %1597 = vmatmul.mubr.bf16.vlgmr.msra.gmra.mrb[32].mxu0 %v800_v38  ;;  %v789_v55 = vmax.f32 %v745_v41, 0.0 }
 0x419   :  { %v740_v54 = vadd.f32 %v1317_v26, %v739_v46  ;;  %v787_v58 = vmax.f32 %v737_v43, 0.0 }
 0x41a   :  { %v790_v57 = vmax.f32 %v748_v45, 0.0 }
 0x41b   :  { %v788_v59 = vmax.f32 %v740_v54, 0.0 }
 0x41c   :  { %v802_v60 = vpack.c.bf16 %v790_v57, %v789_v55  ;;  %v1869_v57 = vmov 0.0  }
 0x41d   :  { %v801_v61 = vpack.c.bf16 %v788_v59, %v787_v58  ;;  %v1574_v56 = vpop.f32.mrb[24].mxu1  ;;  %1644 = vmatprep.subr.bf16.mxu0 %v1869_v57  ;;  %v1327_v58 = vld [vmem:[%s2074_s3 + $0x2] ss:$0 sm:$0xff] }
 0x41e   :  { %v761_v62 = vadd.f32 %v1574_v56, %v1317_v26  ;;  %v752_v63 = vpop.f32.mrb[25].mxu1 }
 0x41f   :  { %v753_v0 = vadd.f32 %v1317_v26, %v752_v63  ;;  %v1575_v1 = vpop.f32.mrb[26].mxu1  ;;  %1600 = vmatprep.mubr.bf16.mxu0 %v801_v61 }
 0x420   :  { %v764_v2 = vadd.f32 %v1575_v1, %v1317_v26  ;;  %v755_v3 = vpop.f32.mrb[27].mxu1  ;;  %1601 = vmatmul.mubr.bf16.gmra.mrb[36].mxu0 %v802_v60  ;;  %v793_v5 = vmax.f32 %v761_v62, 0.0 }
 0x421   :  { %v756_v4 = vadd.f32 %v1317_v26, %v755_v3  ;;  %v791_v7 = vmax.f32 %v753_v0, 0.0 }
 0x422   :  { %v794_v6 = vmax.f32 %v764_v2, 0.0 }
 0x423   :  { %v792_v8 = vmax.f32 %v756_v4, 0.0 }
 0x424   :  { %v804_v9 = vpack.c.bf16 %v794_v6, %v793_v5 }
 0x425   :  { %v803_v10 = vpack.c.bf16 %v792_v8, %v791_v7  ;;  %v1578_v11 = vpop.f32.mrb[28].mxu1 }
 0x426   :  { %v777_v12 = vadd.f32 %v1578_v11, %v1317_v26  ;;  %v768_v13 = vpop.f32.mrb[29].mxu1 }
 0x427   :  { %v769_v14 = vadd.f32 %v1317_v26, %v768_v13  ;;  %v1579_v15 = vpop.f32.mrb[30].mxu1  ;;  %1604 = vmatprep.mubr.bf16.mxu0 %v803_v10 }
 0x428   :  { %v780_v17 = vadd.f32 %v1579_v15, %v1317_v26  ;;  %v771_v18 = vpop.f32.mrb[31].mxu1  ;;  %1605 = vmatmul.mubr.bf16.gmra.mrb[40].mxu0 %v804_v9  ;;  %v797_v20 = vmax.f32 %v777_v12, 0.0 }
 0x429   :  { %v772_v19 = vadd.f32 %v1317_v26, %v771_v18  ;;  %v795_v22 = vmax.f32 %v769_v14, 0.0 }
 0x42a   :  { %v798_v21 = vmax.f32 %v780_v17, 0.0 }
 0x42b   :  { %v796_v23 = vmax.f32 %v772_v19, 0.0 }
 0x42c   :  { %v806_v24 = vpack.c.bf16 %v798_v21, %v797_v20 }
 0x42d   :  { %v805_v25 = vpack.c.bf16 %v796_v23, %v795_v22 }
 0x42f   :  { %1608 = vmatprep.mubr.bf16.mxu0 %v805_v25 }
 0x430   :  { %1609 = vmatmul.mubr.bf16.gmra.mrb[44].mxu0 %v806_v24 }
 0x431   :  { %1660 = vmatprep.mubr.msk.bf16.mxu0 %vm1870_vm0, %v1869_v57 }
 0x4eb   :  { %v1598_v27 = vpop.f32.mrb[32].mxu0 }
 0x4ec   :  { %v906_v28 = vpop.f32.mrb[33].mxu0 }
 0x4ed   :  { %v1599_v29 = vpop.f32.mrb[34].mxu0 }
 0x4ee   :  { %v970_v30 = vpack.c.bf16 %v1599_v29, %v1598_v27  ;;  %v909_v31 = vpop.f32.mrb[35].mxu0 }
 0x4ef   :  { %v969_v32 = vpack.c.bf16 %v909_v31, %v906_v28 }
 0x4f1   :  { %1612 = vmatprep.subr.bf16.mxu1 %v969_v32 }
 0x4f2   :  { %1613 = vmatpush3.bf16.msra.mxu1 %v969_v32 }
 0x4f3   :  { %v1602_v33 = vpop.f32.mrb[36].mxu0  ;;  %1614 = vmatprep.subr.bf16.mxu1 %v970_v30 }
 0x4f4   :  { %v922_v34 = vpop.f32.mrb[37].mxu0 }
 0x4f5   :  { %v1603_v26 = vpop.f32.mrb[38].mxu0 }
 0x4f6   :  { %v972_v35 = vpack.c.bf16 %v1603_v26, %v1602_v33  ;;  %v925_v16 = vpop.f32.mrb[39].mxu0  ;;  %1615 = vmatpush3.bf16.msra.mxu1 %v970_v30 }
 0x4f7   :  { %v971_v36 = vpack.c.bf16 %v925_v16, %v922_v34 }
 0x4f9   :  { %1616 = vmatprep.subr.bf16.mxu1 %v971_v36 }
 0x4fa   :  { %1617 = vmatpush3.bf16.msra.mxu1 %v971_v36 }
 0x4fb   :  { %v1606_v37 = vpop.f32.mrb[40].mxu0  ;;  %1618 = vmatprep.subr.bf16.mxu1 %v972_v35 }
 0x4fc   :  { %v938_v38 = vpop.f32.mrb[41].mxu0 }
 0x4fd   :  { %v1607_v39 = vpop.f32.mrb[42].mxu0 }
 0x4fe   :  { %v974_v40 = vpack.c.bf16 %v1607_v39, %v1606_v37  ;;  %v941_v41 = vpop.f32.mrb[43].mxu0  ;;  %1619 = vmatpush3.bf16.msra.mxu1 %v972_v35 }
 0x4ff   :  { %v973_v42 = vpack.c.bf16 %v941_v41, %v938_v38 }
 0x501   :  { %1620 = vmatprep.subr.bf16.mxu1 %v973_v42 }
 0x502   :  { %1621 = vmatpush3.bf16.msra.mxu1 %v973_v42 }
 0x503   :  { %v1610_v43 = vpop.f32.mrb[44].mxu0  ;;  %1622 = vmatprep.subr.bf16.mxu1 %v974_v40 }
 0x504   :  { %v954_v44 = vpop.f32.mrb[45].mxu0 }
 0x505   :  { %v1611_v45 = vpop.f32.mrb[46].mxu0 }
 0x506   :  { %v976_v46 = vpack.c.bf16 %v1611_v45, %v1610_v43  ;;  %v957_v54 = vpop.f32.mrb[47].mxu0  ;;  %1623 = vmatpush3.bf16.msra.mxu1 %v974_v40 }
 0x507   :  { %v975_v55 = vpack.c.bf16 %v957_v54, %v954_v44 }
 0x509   :  { %1624 = vmatprep.subr.bf16.mxu1 %v975_v55 }
 0x50a   :  { %1625 = vmatpush3.bf16.msra.mxu1 %v975_v55 }
 0x50b   :  { %1626 = vmatprep.subr.bf16.mxu1 %v976_v46 }
 0x50e   :  { %1627 = vmatpush3.bf16.msra.mxu1 %v976_v46 }
 0x50f   :  { %1664 = vmatprep.subr.bf16.mxu1 %v1869_v57 }
 0x511   :  { %1629 = vmatmul.mubr.bf16.vlgmr.msra.gmra.mrb[32].mxu1 %v1989_v47  ;;  %v1733_v47 = vld [vmem:[#allocation8] sm:$0xff]  }
 0x512   :  { %1632 = vmatprep.mubr.bf16.mxu1 %v1991_v48  ;;  %1665 = vmatpush3.bf16.msra.mxu1 %v1733_v47  ;;  %v1734_v48 = vld [vmem:[#allocation8 + $0x8] sm:$0xff]  }
 0x513   :  { %1666 = vmatprep.subr.bf16.mxu1 %v1869_v57 }
 0x516   :  { %1667 = vmatpush3.bf16.msra.mxu1 %v1734_v48  ;;  %v1106_v48 = vld [vmem:[%s2075_s4] sm:$0xf]  ;;  %s1871_s4 = smov [#allocation10]  }
 0x517   :  { %1668 = vmatprep.subr.bf16.mxu1 %v1869_v57  ;;  %s1272_s10 = sshll.u32 %s1871_s4, 4  ;;  %s1273_s10 = int_to_ptr.vmem [resolvable:$true] %s1272_s10 }
 0x518   :  { %s1833_s11 = scalar_lea.vmem %s1273_s10, 128  ;;  %p1838_p5 = scmp.lt.s32.totalorder %s1273_s10, %s1273_s10 }
 0x519   :  { %1633 = vmatmul.mubr.bf16.gmra.mrb[36].mxu1 %v1995_v49  ;;  %v1735_v49 = vld [vmem:[#allocation8 + $0x10] sm:$0xff]   ;;  %p1834_p4 = scmp.ne.s32.totalorder %s1273_s10, %s1833_s11  ;;  %p1839_p6 = scmp.lt.s32.totalorder %s1833_s11, %s1833_s11 }
 0x51a   :  { %1636 = vmatprep.mubr.bf16.mxu1 %v1997_v50  ;;  %1669 = vmatpush3.bf16.msra.mxu1 %v1735_v49  ;;  %v1736_v50 = vld [vmem:[#allocation8 + $0x18] sm:$0xff]  }
 0x51b   :  { %1670 = vmatprep.subr.bf16.mxu1 %v1869_v57  ;;  %v1740_v49 = vld [vmem:[#allocation8 + $0x38] sm:$0xff]   ;;  %p1840_p7 = por %p1839_p6, %p1838_p5 }
 0x51d   :  { %p1841_p8 = pnand %p1840_p7, %p1834_p4 }
 0x51e   :  { %1671 = vmatpush3.bf16.msra.mxu1 %v1736_v50 }
 0x51f   :  { %1672 = vmatprep.subr.bf16.mxu1 %v1869_v57 }
 0x521   :  { %1637 = vmatmul.mubr.bf16.gmra.mrb[40].mxu1 %v2001_v51  ;;  %v1737_v51 = vld [vmem:[#allocation8 + $0x20] sm:$0xff]  }
 0x522   :  { %1640 = vmatprep.mubr.bf16.mxu1 %v2003_v52  ;;  %1673 = vmatpush3.bf16.msra.mxu1 %v1737_v51  ;;  %v1738_v52 = vld [vmem:[#allocation8 + $0x28] sm:$0xff]  }
 0x523   :  { %1674 = vmatprep.subr.bf16.mxu1 %v1869_v57 }
 0x526   :  { %1675 = vmatpush3.bf16.msra.mxu1 %v1738_v52 }
 0x527   :  { %1676 = vmatprep.subr.bf16.mxu1 %v1869_v57 }
 0x529   :  { %1641 = vmatmul.mubr.bf16.gmra.mrb[44].mxu1 %v2007_v53  ;;  %v1739_v53 = vld [vmem:[#allocation8 + $0x30] sm:$0xff]  }
 0x52a   :  { %1680 = vmatprep.mubr.msk.bf16.mxu1 %vm1870_vm0, %v1869_v57  ;;  %1677 = vmatpush3.bf16.msra.mxu1 %v1739_v53 }
 0x52b   :  { %1678 = vmatprep.subr.bf16.mxu1 %v1869_v57 }
 0x52e   :  { %1679 = vmatpush3.bf16.msra.mxu1 %v1740_v49 }
 0x5e4   :  { %v1630_v59 = vpop.f32.mrb[32].mxu1 }
 0x5e5   :  { %v1028_v60 = vadd.f32 %v1630_v59, %v1327_v58  ;;  %v1019_v61 = vpop.f32.mrb[33].mxu1  ;;  %v1328_v59 = vld [vmem:[%s2077_s6] ss:$0 sm:$0xff] }
 0x5e6   :  { %v1020_v56 = vadd.f32 %v1327_v58, %v1019_v61  ;;  %v1631_v62 = vpop.f32.mrb[34].mxu1 }
 0x5e7   :  { %v1031_v63 = vadd.f32 %v1631_v62, %v1327_v58  ;;  %v1022_v0 = vpop.f32.mrb[35].mxu1  ;;  %v1084_v2 = vmax.f32 %v1028_v60, 0.0 }
 0x5e8   :  { %v1023_v1 = vadd.f32 %v1327_v58, %v1022_v0  ;;  %v1082_v4 = vmax.f32 %v1020_v56, 0.0 }
 0x5e9   :  { %v1085_v3 = vmax.f32 %v1031_v63, 0.0 }
 0x5ea   :  { %v1083_v5 = vmax.f32 %v1023_v1, 0.0 }
 0x5eb   :  { %v1099_v6 = vpack.c.bf16 %v1085_v3, %v1084_v2 }
 0x5ec   :  { %v1098_v7 = vpack.c.bf16 %v1083_v5, %v1082_v4  ;;  %v1634_v8 = vpop.f32.mrb[36].mxu1 }
 0x5ed   :  { %v1044_v9 = vadd.f32 %v1634_v8, %v1327_v58  ;;  %v1035_v10 = vpop.f32.mrb[37].mxu1 }
 0x5ee   :  { %v1036_v11 = vadd.f32 %v1327_v58, %v1035_v10  ;;  %v1635_v12 = vpop.f32.mrb[38].mxu1  ;;  %1645 = vmatpush3.bf16.msra.mxu0 %v1098_v7 }
 0x5ef   :  { %v1047_v13 = vadd.f32 %v1635_v12, %v1327_v58  ;;  %v1038_v14 = vpop.f32.mrb[39].mxu1  ;;  %1646 = vmatprep.subr.bf16.mxu0 %v1869_v57  ;;  %v1088_v17 = vmax.f32 %v1044_v9, 0.0 }
 0x5f0   :  { %v1039_v15 = vadd.f32 %v1327_v58, %v1038_v14  ;;  %v1086_v19 = vmax.f32 %v1036_v11, 0.0 }
 0x5f1   :  { %v1089_v18 = vmax.f32 %v1047_v13, 0.0 }
 0x5f2   :  { %v1087_v20 = vmax.f32 %v1039_v15, 0.0  ;;  %1647 = vmatpush3.bf16.msra.mxu0 %v1099_v6 }
 0x5f3   :  { %v1101_v21 = vpack.c.bf16 %v1089_v18, %v1088_v17  ;;  %1648 = vmatprep.subr.bf16.mxu0 %v1869_v57 }
 0x5f4   :  { %v1100_v22 = vpack.c.bf16 %v1087_v20, %v1086_v19  ;;  %v1638_v23 = vpop.f32.mrb[40].mxu1 }
 0x5f5   :  { %v1060_v24 = vadd.f32 %v1638_v23, %v1327_v58  ;;  %v1051_v25 = vpop.f32.mrb[41].mxu1 }
 0x5f6   :  { %v1052_v27 = vadd.f32 %v1327_v58, %v1051_v25  ;;  %v1639_v28 = vpop.f32.mrb[42].mxu1  ;;  %1649 = vmatpush3.bf16.msra.mxu0 %v1100_v22 }
 0x5f7   :  { %v1063_v29 = vadd.f32 %v1639_v28, %v1327_v58  ;;  %v1054_v30 = vpop.f32.mrb[43].mxu1  ;;  %1650 = vmatprep.subr.bf16.mxu0 %v1869_v57  ;;  %v1092_v32 = vmax.f32 %v1060_v24, 0.0 }
 0x5f8   :  { %v1055_v31 = vadd.f32 %v1327_v58, %v1054_v30  ;;  %v1090_v34 = vmax.f32 %v1052_v27, 0.0 }
 0x5f9   :  { %v1093_v33 = vmax.f32 %v1063_v29, 0.0 }
 0x5fa   :  { %v1091_v26 = vmax.f32 %v1055_v31, 0.0  ;;  %1651 = vmatpush3.bf16.msra.mxu0 %v1101_v21 }
 0x5fb   :  { %v1103_v35 = vpack.c.bf16 %v1093_v33, %v1092_v32  ;;  %1652 = vmatprep.subr.bf16.mxu0 %v1869_v57 }
 0x5fc   :  { %v1102_v16 = vpack.c.bf16 %v1091_v26, %v1090_v34  ;;  %v1642_v36 = vpop.f32.mrb[44].mxu1 }
 0x5fd   :  { %v1076_v37 = vadd.f32 %v1642_v36, %v1327_v58  ;;  %v1067_v38 = vpop.f32.mrb[45].mxu1 }
 0x5fe   :  { %v1068_v39 = vadd.f32 %v1327_v58, %v1067_v38  ;;  %v1643_v40 = vpop.f32.mrb[46].mxu1  ;;  %1653 = vmatpush3.bf16.msra.mxu0 %v1102_v16 }
 0x5ff   :  { %v1079_v41 = vadd.f32 %v1643_v40, %v1327_v58  ;;  %v1070_v42 = vpop.f32.mrb[47].mxu1  ;;  %1654 = vmatprep.subr.bf16.mxu0 %v1869_v57  ;;  %v1096_v44 = vmax.f32 %v1076_v37, 0.0 }
 0x600   :  { %v1071_v43 = vadd.f32 %v1327_v58, %v1070_v42  ;;  %v1094_v46 = vmax.f32 %v1068_v39, 0.0 }
 0x601   :  { %v1097_v45 = vmax.f32 %v1079_v41, 0.0 }
 0x602   :  { %v1095_v54 = vmax.f32 %v1071_v43, 0.0  ;;  %1655 = vmatpush3.bf16.msra.mxu0 %v1103_v35 }
 0x603   :  { %v1105_v55 = vpack.c.bf16 %v1097_v45, %v1096_v44  ;;  %1656 = vmatprep.subr.bf16.mxu0 %v1869_v57 }
 0x604   :  { %v1104_v47 = vpack.c.bf16 %v1095_v54, %v1094_v46 }
 0x606   :  { %1657 = vmatpush3.bf16.msra.mxu0 %v1104_v47 }
 0x607   :  { %1658 = vmatprep.subr.bf16.mxu0 %v1869_v57 }
 0x60a   :  { %1659 = vmatpush3.bf16.msra.mxu0 %v1105_v55 }
 0x60d   :  { %1661 = vmatmul.mubr.bf16.vlgmr.msra.gmra.mrb[48].mxu0 %v1106_v48 }
 0x6e0   :  { %v1141_v50 = vpop.f32.mrb[48].mxu0 }
 0x6e1   :  { %v1147_v51 = vpack.c.bf16 %v1141_v50, %v1141_v50  ;;  %v1662_v52 = vpop.f32.mrb[49].mxu0 }
 0x6e2   :  { %v1144_v53 = vpop.f32.mrb[50].mxu0 }
 0x6e3   :  { %v1663_v58 = vpop.f32.mrb[51].mxu0  ;;  %1681 = vmatmul.mubr.bf16.vlgmr.msra.gmra.mrb[48].mxu1 %v1147_v51 }
 0x7b6   :  { %v1253_v60 = vpop.f32.mrb[48].mxu1 }
 0x7b7   :  { %v1254_v57 = vadd.f32 %v1328_v59, %v1253_v60  ;;  %v1682_v61 = vpop.f32.mrb[49].mxu1 }
 0x7b8   :  { %v1256_v56 = vpop.f32.mrb[50].mxu1 }
 0x7b9   :  { %v1337_v62 = vmul.f32 -1.442695, %v1254_v57  ;;  %v1683_v63 = vpop.f32.mrb[51].mxu1 }
 0x7bb   :  { %1741 = vpow2.f32 %v1337_v62 }
 0x7c5   :  { %v1742_v0 = vpop.eup %1741 }
 0x7c6   :  { %v1262_v1 = vadd.f32 1.0, %v1742_v0 }
 0x7c8   :  { %1743 = vrcp.f32 %v1262_v1 }
 0x7d2   :  { %v1744_v2 = vpop.eup %1743 }
 0x7d3   :  { %1265 = vst [vmem:[#allocation10] sm:$0xff] %v1744_v2 }
 0x7d4   :  { %1844 = shalt.err (!%p1841_p8)
}
 0x7d5   :  { %s1845_s15 = scalar_lea.hbm %s2078_s7, 128 }
 0x7d6   :  { %p1846_p9 = scmp.ne.s32.totalorder %s2078_s7, %s1845_s15  ;;  %p1849_p10 = scmp.lt.u32.totalorder %s1845_s15, %s2078_s7 }
 0x7d8   :  { %p1851_p11 = pnand %p1849_p10, %p1846_p9 }
 0x7da   :  { %1854 = shalt.err (!%p1851_p11)
}
 0x7db   :  { %1275 = dma.vmem_to_hbm [thread:$0]  %s1273_s10, 128, %s2078_s7, [#allocation4]  }
 0x7dc   :  { %1861 = dma.done.wait [#allocation4], 128  }
 0x7dd   :  { %1862 = vsyncadd [#allocation4], 4294967168 }
 0x7de   :  { %1279 = vsyncpa [#allocation3], 1 }
 0x7df   :  { %1280 = vsyncpa [#allocation6], 1 }
 0x7e0   :  { %1281 = vsyncpa [#allocation9], 1 }
 0x7e1   :  { %1282 = vsyncpa [#allocation4], 1 }

</bundles_post_ra>
